<compile_context>
chip_gen: v7x
topology: tpu7x:2x2x1
jax: 0.10.0
libtpu: 0.0.40
codegen_flags: <defaults>
</compile_context>

<pallas_src>
import jax
import jax.numpy as jnp
import numpy as np
from jax.experimental import pallas as pl
from jax.experimental.pallas import tpu as pltpu


def self_attn_kernel(x_ref, wq_ref, bq_ref, wkv_ref, bkv_ref, gamma_ref,
                     out_ref, attn_ref, kT_sc, v_sc):
    """One (batch, query-tile) grid step.

    x_ref   : (1, N, C)   f32   full row block for this batch
    wq_ref  : (C, KP)     bf16  padded query projection (transposed)
    bq_ref  : (1, KP)     f32
    wkv_ref : (C, KP+C)   bf16  fused [Wk^T | Wv^T]
    bkv_ref : (1, KP+C)   f32
    gamma_ref: (1,)       f32   SMEM scalar
    out_ref : (1, TQ, C)  f32
    attn_ref: (1, TQ, N)  f32 (or bf16)
    kT_sc   : (KP, N)     bf16  per-batch key projection, transposed (persistent)
    v_sc    : (N, C)      bf16  per-batch value projection (persistent)
    """
    qi = pl.program_id(1)
    tq = out_ref.shape[1]
    kp = kT_sc.shape[0]
    gamma = gamma_ref[0]                                   # SMEM scalar read

    # ---- per-batch K/V projections: computed once per batch -----------------
    # NOTE: correctness relies on the query-tile axis being "arbitrary"
    # (sequential) with batch as the outer grid axis, so qi > 0 steps read the
    # scratch filled at qi == 0 of the same batch.  Do not mark it "parallel".
    @pl.when(qi == 0)
    def _():
        x_b = x_ref[0].astype(jnp.bfloat16)                # (N, C) bf16 operand
        kv = jnp.dot(x_b, wkv_ref[...],
                     preferred_element_type=jnp.float32) + bkv_ref[...]  # (N, KP+C)
        # Store k transposed ONCE per batch so every query tile's energy matmul
        # is a plain (TQ,KP)x(KP,N) MXU dot (no per-tile relayout/transpose).
        kT_sc[...] = kv[:, :kp].T.astype(jnp.bfloat16)     # (KP, N)
        v_sc[...] = kv[:, kp:].astype(jnp.bfloat16)        # (N, C)

    # ---- per-tile query projection (no persistent q scratch) ----------------
    row0 = pl.multiple_of(qi * tq, tq)
    x_q = x_ref[0, pl.ds(row0, tq), :]                     # (TQ, C) f32 residual rows
    q = jnp.dot(x_q.astype(jnp.bfloat16), wq_ref[...],
                preferred_element_type=jnp.float32) + bq_ref[...]        # (TQ, KP) f32

    # energy[i, j] = <q_i, k_j>; bf16 MXU operands, f32 accumulation.
    energy = jnp.dot(q.astype(jnp.bfloat16), kT_sc[...],
                     preferred_element_type=jnp.float32)   # (TQ, N) f32

    # Numerically stable row softmax; one exact reciprocal per row + multiplies.
    m = jnp.max(energy, axis=-1, keepdims=True)
    p = jnp.exp(energy - m)
    denom = jnp.sum(p, axis=-1, keepdims=True)
    attn = p * pl.reciprocal(denom, approx=False)          # (TQ, N) f32
    attn_ref[0] = attn.astype(attn_ref.dtype)

    # out[i, c] = sum_j attn[i, j] * v[j, c]
    out = jnp.dot(attn.astype(jnp.bfloat16), v_sc[...],
                  preferred_element_type=jnp.float32)      # (TQ, C) f32
    out_ref[0] = gamma * out + x_q


def _vmem_capacity_bytes():
    """Physical VMEM of the current generation (v5e/v6e: 128 MiB, v7x: 64 MiB)."""
    try:
        return int(pltpu.get_tpu_info().vmem_capacity_bytes)
    except Exception:
        return 64 * 1024 * 1024     # conservative (v7x-sized) fallback


def _vmem_estimate_bytes(n, c, kp, tq, attn_bytes=4):
    f32, bf16 = 4, 2
    est = 0
    est += 2 * n * c * f32                          # x block (double buffered)
    est += 2 * (c * kp + c * (kp + c)) * bf16       # Wq^T, [Wk^T|Wv^T] (double buffered)
    est += 2 * (kp + (kp + c)) * f32                # biases
    est += 2 * tq * c * f32                         # out block (double buffered)
    est += 2 * tq * n * attn_bytes                  # attention block (double buffered)
    est += (kp * n + n * c) * bf16                  # kT / v persistent scratch
    est += n * (kp + c) * f32                       # kv projection temporary (qi==0)
    est += 4 * tq * n * f32                         # energy / p / attn temporaries
    est += tq * kp * f32                            # q tile
    return est


def _pick_tq(n, c, kp, budget, attn_bytes=4):
    """Largest query tile (divisor of N, multiple of 8) whose estimate fits."""
    candidates = [t for t in (1024, 512, 256, 128, 64, 32, 16, 8) if n % t == 0]
    if not candidates:
        candidates = [n]
    for t in candidates:
        if _vmem_estimate_bytes(n, c, kp, t, attn_bytes) <= budget:
            return t
    return candidates[-1]


def self_attn_forward(x_nchw, wq, bq, wk, bk, wv, bv, gamma, *, tq=None,
                      attn_dtype=jnp.float32):
    """x_nchw: (B, C, W, H) f32. Returns (out (B,C,W,H) f32, attention (B,N,N))."""
    B, C, W, H = x_nchw.shape
    N = W * H
    C8 = wq.shape[0]

    # Glue: NCHW -> (B, N, C)
    x_bnc = jnp.transpose(x_nchw.reshape(B, C, N), (0, 2, 1)).astype(jnp.float32)

    # PyTorch stores (out_ch, in_ch); kernel wants (in_ch, out_ch), bf16 for MXU.
    # q/k widths are zero-padded to >=128 lanes (exact: extra cols are zero in
    # both q and k so they contribute nothing to energy).
    KP = max(128, ((C8 + 127) // 128) * 128)
    wq_t = jnp.zeros((C, KP), jnp.float32).at[:, :C8].set(wq.T).astype(jnp.bfloat16)
    bq_r = jnp.zeros((1, KP), jnp.float32).at[:, :C8].set(bq.reshape(1, C8))
    wk_t = jnp.zeros((C, KP), jnp.float32).at[:, :C8].set(wk.T)
    wv_t = wv.T.astype(jnp.float32)
    wkv_t = jnp.concatenate([wk_t, wv_t], axis=1).astype(jnp.bfloat16)   # (C, KP+C)
    bkv_r = jnp.zeros((1, KP + C), jnp.float32)
    bkv_r = bkv_r.at[:, :C8].set(bk.reshape(1, C8)).at[:, KP:].set(bv.reshape(1, C))
    gamma_r = gamma.reshape(1).astype(jnp.float32)

    attn_bytes = jnp.dtype(attn_dtype).itemsize
    cap = _vmem_capacity_bytes()
    if tq is None:
        tq = _pick_tq(N, C, KP, int(0.65 * cap), attn_bytes)
    assert N % tq == 0
    nq = N // tq

    est = _vmem_estimate_bytes(N, C, KP, tq, attn_bytes)
    # Generation-aware: never request the whole physical VMEM (leave headroom
    # for Mosaic scratch/semaphores); on 128 MiB parts this may exceed 64 MiB.
    vmem_limit = int(min(0.85 * cap, max(32 * 1024 * 1024, 1.5 * est)))

    out_bnc, attn = pl.pallas_call(
        self_attn_kernel,
        out_shape=(
            jax.ShapeDtypeStruct((B, N, C), jnp.float32),
            jax.ShapeDtypeStruct((B, N, N), attn_dtype),
        ),
        grid_spec=pltpu.PrefetchScalarGridSpec(
            num_scalar_prefetch=0,
            grid=(B, nq),
            in_specs=[
                pl.BlockSpec((1, N, C), lambda b, q: (b, 0, 0)),     # x (full N / batch)
                pl.BlockSpec((C, KP), lambda b, q: (0, 0)),          # Wq^T (bf16, padded)
                pl.BlockSpec((1, KP), lambda b, q: (0, 0)),          # bq (padded)
                pl.BlockSpec((C, KP + C), lambda b, q: (0, 0)),      # [Wk^T|Wv^T] (bf16)
                pl.BlockSpec((1, KP + C), lambda b, q: (0, 0)),      # [bk|bv]
                pl.BlockSpec(memory_space=pltpu.MemorySpace.SMEM),   # gamma scalar
            ],
            out_specs=[
                pl.BlockSpec((1, tq, C), lambda b, q: (b, q, 0)),    # out tile
                pl.BlockSpec((1, tq, N), lambda b, q: (b, q, 0)),    # attention tile
            ],
            scratch_shapes=[
                pltpu.VMEM((KP, N), jnp.bfloat16),                   # k^T (per batch)
                pltpu.VMEM((N, C), jnp.bfloat16),                    # v   (per batch)
            ],
        ),
        compiler_params=pltpu.CompilerParams(
            dimension_semantics=("parallel", "arbitrary"),
            vmem_limit_bytes=vmem_limit),
    )(x_bnc, wq_t, bq_r, wkv_t, bkv_r, gamma_r)

    # Glue: (B, N, C) -> NCHW
    out_nchw = jnp.transpose(out_bnc, (0, 2, 1)).reshape(B, C, W, H)
    return out_nchw, attn


def _reference(x_nchw, wq, bq, wk, bk, wv, bv, gamma):
    """Pure-JAX reference mirroring the PyTorch forward, with the same bf16 MXU
    operand casts (f32 accumulation) as the kernel.  A pure-f32 PyTorch-exact
    reference agrees with this one to ~1e-2 at these scales."""
    B, C, W, H = x_nchw.shape
    N = W * H
    x_bnc = jnp.transpose(x_nchw.reshape(B, C, N), (0, 2, 1))          # (B, N, C)
    xb = x_bnc.astype(jnp.bfloat16)
    f32 = jnp.float32
    q = jnp.einsum('bnc,oc->bno', xb, wq.astype(jnp.bfloat16),
                   preferred_element_type=f32) + bq                    # (B, N, C8)
    k = jnp.einsum('bnc,oc->bno', xb, wk.astype(jnp.bfloat16),
                   preferred_element_type=f32) + bk
    v = jnp.einsum('bnc,oc->bno', xb, wv.astype(jnp.bfloat16),
                   preferred_element_type=f32) + bv                    # (B, N, C)
    energy = jnp.einsum('bio,bjo->bij', q.astype(jnp.bfloat16),
                        k.astype(jnp.bfloat16), preferred_element_type=f32)
    attn = jax.nn.softmax(energy, axis=-1)                             # (B, N, N)
    out = jnp.einsum('bij,bjc->bic', attn.astype(jnp.bfloat16),
                     v.astype(jnp.bfloat16), preferred_element_type=f32)
    out = gamma * out + x_bnc
    out_nchw = jnp.transpose(out, (0, 2, 1)).reshape(B, C, W, H)
    return out_nchw, attn


if __name__ == "__main__":
    B, C, W, H = 2, 32, 8, 8          # C//8 = 4, N = 64
    C8 = C // 8

    key = jax.random.PRNGKey(0)
    ks = jax.random.split(key, 8)
    x = jax.random.normal(ks[0], (B, C, W, H), dtype=jnp.float32)

    # Deterministic parameter init (kaiming-ish scale for 1x1 convs).
    wq = jax.random.normal(ks[1], (C8, C), dtype=jnp.float32) / np.sqrt(C)
    bq = jax.random.normal(ks[2], (C8,), dtype=jnp.float32) * 0.01
    wk = jax.random.normal(ks[3], (C8, C), dtype=jnp.float32) / np.sqrt(C)
    bk = jax.random.normal(ks[4], (C8,), dtype=jnp.float32) * 0.01
    wv = jax.random.normal(ks[5], (C, C), dtype=jnp.float32) / np.sqrt(C)
    bv = jax.random.normal(ks[6], (C,), dtype=jnp.float32) * 0.01
    # The module inits gamma to 0; use a nonzero value so the residual blend is tested.
    gamma = jnp.full((1,), 0.5, dtype=jnp.float32)

    out, attn = jax.block_until_ready(
        self_attn_forward(x, wq, bq, wk, bk, wv, bv, gamma))

    ref_out, ref_attn = _reference(x, wq, bq, wk, bk, wv, bv, gamma)
    np.testing.assert_allclose(np.asarray(out), np.asarray(ref_out),
                               rtol=1e-2, atol=1e-2)
    np.testing.assert_allclose(np.asarray(attn), np.asarray(ref_attn),
                               rtol=1e-2, atol=1e-2)

    print("KERNEL_OK")
</pallas_src>

<mosaic_0001>
module attributes {stable_mosaic.version = 11 : i64} {
  func.func @self_attn_kernel(%arg0: i32, %arg1: i32, %arg2: memref<1x64x32xf32, #tpu.memory_space<vmem>>, %arg3: memref<32x128xbf16, #tpu.memory_space<vmem>>, %arg4: memref<1x128xf32, #tpu.memory_space<vmem>>, %arg5: memref<32x160xbf16, #tpu.memory_space<vmem>>, %arg6: memref<1x160xf32, #tpu.memory_space<vmem>>, %arg7: memref<1xf32, #tpu.memory_space<smem>>, %arg8: memref<1x64x32xf32, #tpu.memory_space<vmem>>, %arg9: memref<1x64x64xf32, #tpu.memory_space<vmem>>, %arg10: memref<128x64xbf16, #tpu.memory_space<vmem>>, %arg11: memref<64x32xbf16, #tpu.memory_space<vmem>>) attributes {dimension_semantics = [#tpu.dimension_semantics<parallel>, #tpu.dimension_semantics<arbitrary>], iteration_bounds = array<i64: 2, 1>, scalar_prefetch = 0 : i64, scratch_operands = 2 : i64, tpu.core_type = #tpu.core_type<tc>, window_params = [{transform_indices = @transform_0, window_bounds = array<i64: 1, 64, 32>}, {pipeline_mode = #tpu.pipeline_mode<synchronous>, transform_indices = @transform_1, window_bounds = array<i64: 32, 128>}, {pipeline_mode = #tpu.pipeline_mode<synchronous>, transform_indices = @transform_2, window_bounds = array<i64: 1, 128>}, {pipeline_mode = #tpu.pipeline_mode<synchronous>, transform_indices = @transform_3, window_bounds = array<i64: 32, 160>}, {pipeline_mode = #tpu.pipeline_mode<synchronous>, transform_indices = @transform_4, window_bounds = array<i64: 1, 160>}, {transform_indices = @transform_5, window_bounds = array<i64: 1>}, {transform_indices = @transform_6, window_bounds = array<i64: 1, 64, 32>}, {transform_indices = @transform_7, window_bounds = array<i64: 1, 64, 64>}]} {
    %c0 = arith.constant 0 : index
    %0 = memref.load %arg7[%c0] : memref<1xf32, #tpu.memory_space<smem>>
    %c0_i32 = arith.constant 0 : i32
    %1 = arith.cmpi eq, %arg1, %c0_i32 : i32
    %2 = arith.extui %1 : i1 to i32
    %c0_i32_0 = arith.constant 0 : i32
    %3 = arith.cmpi ne, %2, %c0_i32_0 : i32
    scf.if %3 {
      %c0_21 = arith.constant 0 : index
      %c0_22 = arith.constant 0 : index
      %c0_23 = arith.constant 0 : index
      %40 = vector.load %arg2[%c0_21, %c0_22, %c0_23] : memref<1x64x32xf32, #tpu.memory_space<vmem>>, vector<1x64x32xf32>
      %41 = vector.shape_cast %40 : vector<1x64x32xf32> to vector<64x32xf32>
      %42 = arith.truncf %41 : vector<64x32xf32> to vector<64x32xbf16>
      %c0_24 = arith.constant 0 : index
      %c0_25 = arith.constant 0 : index
      %43 = vector.load %arg5[%c0_24, %c0_25] : memref<32x160xbf16, #tpu.memory_space<vmem>>, vector<32x160xbf16>
      %cst_26 = arith.constant dense<0.000000e+00> : vector<64x160xf32>
      %44 = tpu.matmul %42, %43, %cst_26 {dimension_numbers = #tpu.dot_dimension_numbers<[1], [0], [0], [1], [0, 0, 1, 1], [], []>} : vector<64x32xbf16>, vector<32x160xbf16>, vector<64x160xf32> -> vector<64x160xf32>
      %c0_27 = arith.constant 0 : index
      %c0_28 = arith.constant 0 : index
      %45 = vector.load %arg6[%c0_27, %c0_28] : memref<1x160xf32, #tpu.memory_space<vmem>>, vector<1x160xf32>
      %46 = vector.broadcast %45 : vector<1x160xf32> to vector<64x160xf32>
      %47 = arith.addf %44, %46 : vector<64x160xf32>
      %48 = vector.extract_strided_slice %47 {offsets = [0, 0], sizes = [64, 128], strides = [1, 1]} : vector<64x160xf32> to vector<64x128xf32>
      %49 = tpu.transpose %48, [1, 0] : vector<64x128xf32> -> vector<128x64xf32>
      %50 = arith.truncf %49 : vector<128x64xf32> to vector<128x64xbf16>
      %c0_29 = arith.constant 0 : index
      %c0_30 = arith.constant 0 : index
      %51 = vector.load %arg10[%c0_29, %c0_30] : memref<128x64xbf16, #tpu.memory_space<vmem>>, vector<128x64xbf16>
      tpu.vector_store %arg10[%c0_29, %c0_30], %50 {strides = array<i32>} : memref<128x64xbf16, #tpu.memory_space<vmem>>, vector<128x64xbf16>,
      %52 = vector.extract_strided_slice %47 {offsets = [0, 128], sizes = [64, 32], strides = [1, 1]} : vector<64x160xf32> to vector<64x32xf32>
      %53 = arith.truncf %52 : vector<64x32xf32> to vector<64x32xbf16>
      %c0_31 = arith.constant 0 : index
      %c0_32 = arith.constant 0 : index
      %54 = vector.load %arg11[%c0_31, %c0_32] : memref<64x32xbf16, #tpu.memory_space<vmem>>, vector<64x32xbf16>
      tpu.vector_store %arg11[%c0_31, %c0_32], %53 {strides = array<i32>} : memref<64x32xbf16, #tpu.memory_space<vmem>>, vector<64x32xbf16>,
    } else {
    }
    %c64_i32 = arith.constant 64 : i32
    %4 = arith.muli %arg1, %c64_i32 : i32
    %5 = tpu.assume_multiple %4, 64 : i32
    %c0_1 = arith.constant 0 : index
    %6 = arith.index_cast %5 : i32 to index
    %c0_2 = arith.constant 0 : index
    %7 = vector.load %arg2[%c0_1, %6, %c0_2] : memref<1x64x32xf32, #tpu.memory_space<vmem>>, vector<1x64x32xf32>
    %8 = vector.shape_cast %7 : vector<1x64x32xf32> to vector<64x32xf32>
    %9 = arith.truncf %8 : vector<64x32xf32> to vector<64x32xbf16>
    %c0_3 = arith.constant 0 : index
    %c0_4 = arith.constant 0 : index
    %10 = vector.load %arg3[%c0_3, %c0_4] : memref<32x128xbf16, #tpu.memory_space<vmem>>, vector<32x128xbf16>
    %cst = arith.constant dense<0.000000e+00> : vector<64x128xf32>
    %11 = tpu.matmul %9, %10, %cst {dimension_numbers = #tpu.dot_dimension_numbers<[1], [0], [0], [1], [0, 0, 1, 1], [], []>} : vector<64x32xbf16>, vector<32x128xbf16>, vector<64x128xf32> -> vector<64x128xf32>
    %c0_5 = arith.constant 0 : index
    %c0_6 = arith.constant 0 : index
    %12 = vector.load %arg4[%c0_5, %c0_6] : memref<1x128xf32, #tpu.memory_space<vmem>>, vector<1x128xf32>
    %13 = vector.broadcast %12 : vector<1x128xf32> to vector<64x128xf32>
    %14 = arith.addf %11, %13 : vector<64x128xf32>
    %15 = arith.truncf %14 : vector<64x128xf32> to vector<64x128xbf16>
    %c0_7 = arith.constant 0 : index
    %c0_8 = arith.constant 0 : index
    %16 = vector.load %arg10[%c0_7, %c0_8] : memref<128x64xbf16, #tpu.memory_space<vmem>>, vector<128x64xbf16>
    %cst_9 = arith.constant dense<0.000000e+00> : vector<64x64xf32>
    %17 = tpu.matmul %15, %16, %cst_9 {dimension_numbers = #tpu.dot_dimension_numbers<[1], [0], [0], [1], [0, 0, 1, 1], [], []>} : vector<64x128xbf16>, vector<128x64xbf16>, vector<64x64xf32> -> vector<64x64xf32>
    %cst_10 = arith.constant dense<0xFF800000> : vector<64xf32>
    %18 = vector.multi_reduction <maximumf>, %17, %cst_10 [1] : vector<64x64xf32> to vector<64xf32>
    %19 = vector.shape_cast %18 : vector<64xf32> to vector<64x1xf32>
    %20 = vector.broadcast %19 : vector<64x1xf32> to vector<64x64xf32>
    %21 = arith.subf %17, %20 : vector<64x64xf32>
    %22 = math.exp %21 : vector<64x64xf32>
    %cst_11 = arith.constant dense<0.000000e+00> : vector<64xf32>
    %23 = vector.multi_reduction <add>, %22, %cst_11 [1] : vector<64x64xf32> to vector<64xf32>
    %24 = vector.shape_cast %23 : vector<64xf32> to vector<64x1xf32>
    %25 = tpu.reciprocal %24 : vector<64x1xf32> -> vector<64x1xf32>
    %26 = vector.broadcast %25 : vector<64x1xf32> to vector<64x64xf32>
    %27 = arith.mulf %22, %26 : vector<64x64xf32>
    %c0_12 = arith.constant 0 : index
    %c0_13 = arith.constant 0 : index
    %c0_14 = arith.constant 0 : index
    %28 = vector.load %arg9[%c0_12, %c0_13, %c0_14] : memref<1x64x64xf32, #tpu.memory_space<vmem>>, vector<1x64x64xf32>
    %29 = vector.shape_cast %28 : vector<1x64x64xf32> to vector<64x64xf32>
    %30 = vector.shape_cast %27 : vector<64x64xf32> to vector<1x64x64xf32>
    tpu.vector_store %arg9[%c0_12, %c0_13, %c0_14], %30 {strides = array<i32>} : memref<1x64x64xf32, #tpu.memory_space<vmem>>, vector<1x64x64xf32>,
    %31 = arith.truncf %27 : vector<64x64xf32> to vector<64x64xbf16>
    %c0_15 = arith.constant 0 : index
    %c0_16 = arith.constant 0 : index
    %32 = vector.load %arg11[%c0_15, %c0_16] : memref<64x32xbf16, #tpu.memory_space<vmem>>, vector<64x32xbf16>
    %cst_17 = arith.constant dense<0.000000e+00> : vector<64x32xf32>
    %33 = tpu.matmul %31, %32, %cst_17 {dimension_numbers = #tpu.dot_dimension_numbers<[1], [0], [0], [1], [0, 0, 1, 1], [], []>} : vector<64x64xbf16>, vector<64x32xbf16>, vector<64x32xf32> -> vector<64x32xf32>
    %34 = vector.broadcast %0 : f32 to vector<64x32xf32>
    %35 = arith.mulf %34, %33 : vector<64x32xf32>
    %36 = arith.addf %35, %8 : vector<64x32xf32>
    %c0_18 = arith.constant 0 : index
    %c0_19 = arith.constant 0 : index
    %c0_20 = arith.constant 0 : index
    %37 = vector.load %arg8[%c0_18, %c0_19, %c0_20] : memref<1x64x32xf32, #tpu.memory_space<vmem>>, vector<1x64x32xf32>
    %38 = vector.shape_cast %37 : vector<1x64x32xf32> to vector<64x32xf32>
    %39 = vector.shape_cast %36 : vector<64x32xf32> to vector<1x64x32xf32>
    tpu.vector_store %arg8[%c0_18, %c0_19, %c0_20], %39 {strides = array<i32>} : memref<1x64x32xf32, #tpu.memory_space<vmem>>, vector<1x64x32xf32>,
    return
  }
  func.func @transform_0(%arg0: i32, %arg1: i32) -> (i32, i32, i32) {
    %c0_i32 = arith.constant 0 : i32
    %c0_i32_0 = arith.constant 0 : i32
    %c0_i32_1 = arith.constant 0 : i32
    return %arg0, %c0_i32, %c0_i32_0 : i32, i32, i32
  }
  func.func @transform_1(%arg0: i32, %arg1: i32) -> (i32, i32) {
    %c0_i32 = arith.constant 0 : i32
    %c0_i32_0 = arith.constant 0 : i32
    %c0_i32_1 = arith.constant 0 : i32
    return %c0_i32, %c0_i32_0 : i32, i32
  }
  func.func @transform_2(%arg0: i32, %arg1: i32) -> (i32, i32) {
    %c0_i32 = arith.constant 0 : i32
    %c0_i32_0 = arith.constant 0 : i32
    %c0_i32_1 = arith.constant 0 : i32
    return %c0_i32, %c0_i32_0 : i32, i32
  }
  func.func @transform_3(%arg0: i32, %arg1: i32) -> (i32, i32) {
    %c0_i32 = arith.constant 0 : i32
    %c0_i32_0 = arith.constant 0 : i32
    %c0_i32_1 = arith.constant 0 : i32
    return %c0_i32, %c0_i32_0 : i32, i32
  }
  func.func @transform_4(%arg0: i32, %arg1: i32) -> (i32, i32) {
    %c0_i32 = arith.constant 0 : i32
    %c0_i32_0 = arith.constant 0 : i32
    %c0_i32_1 = arith.constant 0 : i32
    return %c0_i32, %c0_i32_0 : i32, i32
  }
  func.func @transform_5(%arg0: i32, %arg1: i32) -> i32 {
    %c0_i32 = arith.constant 0 : i32
    %c0_i32_0 = arith.constant 0 : i32
    return %c0_i32 : i32
  }
  func.func @transform_6(%arg0: i32, %arg1: i32) -> (i32, i32, i32) {
    %c0_i32 = arith.constant 0 : i32
    %c0_i32_0 = arith.constant 0 : i32
    return %arg0, %arg1, %c0_i32 : i32, i32, i32
  }
  func.func @transform_7(%arg0: i32, %arg1: i32) -> (i32, i32, i32) {
    %c0_i32 = arith.constant 0 : i32
    %c0_i32_0 = arith.constant 0 : i32
    return %arg0, %arg1, %c0_i32 : i32, i32, i32
  }
}

</mosaic_0001>

<bundles_post_ra>
// kernel: tpu_custom_call.1
= control target key start
LH: loop header
LB: loop body
LE: loop exit
PB: predicated region body
PF: predicated region fallthrough
CT: control target
= control target key end

     0   :  { %s1665_s0 = inlined_call_operand.vmem [shape: f32[2,64,32], index: 0, kind: input, shape index: {}]   ;;  %s1666_s1 = inlined_call_operand.vmem [shape: bf16[32,128], index: 1, kind: input, shape index: {}]   ;;  %s1667_s2 = inlined_call_operand.vmem [shape: f32[1,128], index: 2, kind: input, shape index: {}]   ;;  %s1668_s3 = inlined_call_operand.vmem [shape: bf16[32,160], index: 3, kind: input, shape index: {}]   ;;  %s1669_s4 = inlined_call_operand.vmem [shape: f32[1,160], index: 4, kind: input, shape index: {}]   ;;  %s1670_s5 = inlined_call_operand.<no memory space> [shape: f32[1], index: 5, kind: input, shape index: {}]   ;;  %s1671_s6 = inlined_call_operand.vmem [shape: f32[2,64,32], index: 6, kind: output, shape index: {0}]   ;;  %s1672_s7 = inlined_call_operand.hbm [shape: f32[2,64,64], index: 7, kind: output, shape index: {1}]  }
   0x1   :  { %13 = sst [smem:[#allocation4]] %s1670_s5 }
   0x2   :  { %14 = vsyncpa [#allocation6], 0 }
   0x3   :  { %16 = vsyncpa [#allocation6 + $0x1], 0  ;;  %s1395_s26 = smov 0   ;;  %s1397_s27 = smov 0  }
   0x4   :  { %s1399_s28 = smov 0   ;;  %s1401_s29 = smov 0  }
   0x5   :  { %s1403_s30 = smov 0   ;;  %s1405_s8 = smov 0  }
   0x6 LB: > { %s1054_s5 = sadd.s32 4294967295, %s1346_s8   ;;  %s1055_s9 = sadd.s32 4294967294, %s1346_s8   ;;  %s1346_s8 = sphi %s1405_s8, %s22_s8   ;;  %s1342_s30 = sphi %s1403_s30, %s1679_s30   ;;  %s1338_s29 = sphi %s1401_s29, %s1678_s29   ;;  %s1334_s28 = sphi %s1399_s28, %s1677_s28   ;;  %s1330_s27 = sphi %s1397_s27, %s1676_s27   ;;  %s1326_s26 = sphi %s1395_s26, %s1675_s26  }
   0x7   : > { %s34_s10 = sadd.s32 1, %s1342_s30  ;;  %s202_s11 = sadd.s32 1, %s1334_s28 }
   0x8   : > { %p36_p0 = scmp.ge.s32.totalorder %s34_s10, 2  ;;  %p212_p1 = scmp.ne.s32.totalorder %s1334_s28, %s1330_s27 }
   0x9   : > { %p213_p2 = scmp.eq.s32.totalorder %s1054_s5, 1  ;;  %p218_p3 = scmp.ne.s32.totalorder %s1330_s27, %s1326_s26 }
   0xa   : > { %s1681_s10 = smov (%p36_p0, %s34_s10), 0  ;;  %p219_p5 = scmp.eq.s32.totalorder %s1055_s9, 1 }
   0xb   : > { %p1435_p4 = por %p213_p2, %p212_p1  ;;  %s197_s13 = ssub.s32 %s1342_s30, %s1681_s10 }
   0xc   : > { %p1058_p6 = scmp.ge.s32.totalorder %s1346_s8, 1  ;;  %p200_p7 = scmp.eq.s32.totalorder %s197_s13, 0 }
   0xd   : > { %p1442_p8 = por %p219_p5, %p218_p3  ;;  %p260_p9 = scmp.lt.s32.totalorder %s1346_s8, 3 }
   0xe   : > { %s1448_s15 = scalar_select %p200_p7, %s1334_s28, %s202_s11  }
   0xf   : > { %p261_p10 = pnand %p1058_p6, %p260_p9 }
  0x10   : > { %v1228_v0 = vld [vmem:[%s1668_s3 + $0x4] ss:$8 sps:$4 sm:$0xff] (!%p261_p10)   ;;  %p301_p11 = scmp.lt.s32.totalorder (!%p261_p10), %s1338_s29, 1  ;;  %v1230_v1 = vld [vmem:[%s1668_s3] ss:$8 sps:$4 sm:$0xff] (!%p261_p10)   ;;  %v1348_v2 = vmov (!%p261_p10), 0   ;;  %v341_v19 = vlaneseq (!%p261_p10) }
  0x11   : > { %264 = sbr.rel (%p261_p10) target bundleno = 1224 (0x4c8), region = 44  ;;  %416 = vmatprep.mubr.bf16.mxu0 (!%p261_p10), %v1348_v2  ;;  %384 = vmatprep.subr.bf16.mxu0 (!%p261_p10), %v1228_v0  ;;  %v1231_v3 = vld [vmem:[%s1668_s3 + $0x14] ss:$8 sps:$4 sm:$0xff] (!%p261_p10)   ;;  %v1233_v4 = vld [vmem:[%s1668_s3 + $0x10] ss:$8 sps:$4 sm:$0xff] (!%p261_p10)   ;;  %v1234_v5 = vld [vmem:[%s1666_s1] sm:$0xff] (!%p261_p10)  }
  0x12   : > { %385 = vmatpush1.bf16.msra.mxu0 (!%p261_p10), %v1230_v1  ;;  %1117 = vmatprep.subr.bf16.mxu1 (!%p261_p10), %v1234_v5  ;;  %v1235_v6 = vld [vmem:[%s1666_s1 + $0x8] sm:$0xff] (!%p261_p10)   ;;  %vm371_vm0 = vcmask (!%p261_p10), 261120   ;;  %v342_v20 = vshrl.u32 (!%p261_p10), %v341_v19, 7  ;;  %v339_v22 = vld [vmem:[%s1669_s4] sm:$0x3] (!%p261_p10)  ;;  %vm497_vm1 = vcmask (!%p261_p10), 523264  }
  0x13   : > { %386 = vmatprep.subr.bf16.mxu0 (!%p261_p10), %v1231_v3  ;;  %1118 = vmatpush3.bf16.msra.mxu1 (!%p261_p10), %v1234_v5  ;;  %v1072_v3 = vld [vmem:[%s1667_s2] ss:$0 sm:$0xff] (!%p261_p10)  ;;  %s298_s23 = sand.u32 (!%p261_p10), 1, %s1330_s27   ;;  %s1090_s11 = sshll.u32 (!%p261_p10), %s1338_s29, 10 }
  0x14   : > { %1119 = vmatprep.subr.bf16.mxu1 (!%p261_p10), %v1235_v6  ;;  %v343_v21 = vsub.s32 (!%p261_p10), 0, %v342_v20  ;;  %v347_v23 = vsub.s32 (!%p261_p10), 1, %v342_v20  ;;  %s1059_s25 = sshll.u32 (!%p261_p10), %s298_s23, 6  ;;  %s1598_s19 = scalar_lea.sflag (!%p261_p10), [#allocation6], %s298_s23 }
  0x15   : > { %s1565_s5 = scalar_lea.vmem (!%p261_p10), [#allocation5], %s1059_s25 }
  0x16   : > { %387 = vmatpush1.bf16.msra.mxu0 (!%p261_p10), %v1233_v4  ;;  %v344_v24 = vrot.slane (!%p261_p10), %v339_v22, %v343_v21  ;;  %v348_v26 = vrot.slane (!%p261_p10), %v339_v22, %v347_v23  ;;  %s942_s13 = sshll.u32 (!%p261_p10), %s1565_s5, 4  ;;  %s1594_s13 = int_to_ptr.vmem [resolvable:$true] %s942_s13 }
  0x17   : > { %1120 = vmatpush3.bf16.msra.mxu1 (!%p261_p10), %v1235_v6  ;;  %s1268_s20 = scalar_lea.vmem (!%p261_p10), %s1594_s13, 1024 }
  0x18   : > { %s1464_s24 = scalar_select %p301_p11, %s1338_s29, 1 }
  0x19   : > { %p1269_p12 = scmp.ne.s32.totalorder %s1594_s13, %s1268_s20  ;;  %s1349_s29 = smov [#allocation5]  }
  0x1a   : > { %s1088_s9 = sshll.u32 %s1464_s24, 6  ;;  %s1272_s21 = sshll.u32 %s1349_s29, 4  ;;  %s1273_s21 = int_to_ptr.vmem [resolvable:$false] %s1272_s21 }
  0x1b   : > { %s305_s18 = scalar_lea.vmem %s1665_s0, %s1088_s9  ;;  %p1270_p13 = pnand %p1269_p12, %p1435_p4 }
  0x1c   : > { %v1478_v7 = vld [vmem:[%s305_s18] sm:$0xff]  ;;  %v1480_v8 = vld [vmem:[%s305_s18 + $0x8] sm:$0xff]  ;;  %v1484_v10 = vld [vmem:[%s305_s18 + $0x10] sm:$0xff]  ;;  %s1274_s22 = scalar_lea.vmem %s1273_s21, 2048  ;;  %p1275_p1 = scmp.lt.s32.totalorder %s1594_s13, %s1273_s21 }
  0x1d   : > { %v331_v9 = vpack.c.bf16 %v1480_v8, %v1478_v7  ;;  %v1486_v11 = vld [vmem:[%s305_s18 + $0x18] sm:$0xff]  ;;  %v1488_v12 = vld [vmem:[%s305_s18 + $0x20] sm:$0xff]  ;;  %v1490_v13 = vld [vmem:[%s305_s18 + $0x28] sm:$0xff]  ;;  %p1271_p0 = pneg %p1270_p13  ;;  %p1276_p2 = scmp.lt.s32.totalorder %s1274_s22, %s1268_s20 }
  0x1e   : > { %v332_v14 = vpack.c.bf16 %v1486_v11, %v1484_v10  ;;  %v333_v15 = vpack.c.bf16 %v1490_v13, %v1488_v12  ;;  %v1500_v16 = vld [vmem:[%s305_s18 + $0x30] sm:$0xff]  ;;  %v1502_v17 = vld [vmem:[%s305_s18 + $0x38] sm:$0xff]  ;;  %s1592_s18 = scalar_lea.hbm %s1672_s7, %s1090_s11 }
  0x1f   : > { %1121 = vmatprep.mubr.msk.bf16.mxu1 %vm371_vm0, %v331_v9  ;;  %1068 = vmatmul.mubr.msk.bf16.vlgmr.msra.gmra.mrb[0].mxu0 %vm371_vm0, %v331_v9  ;;  %v334_v18 = vpack.c.bf16 %v1502_v17, %v1500_v16  ;;  %p1277_p3 = por %p1276_p2, %p1275_p1 }
  0x20   : > { %426 = vmatprep.mubr.bf16.mxu0 %v1348_v2  ;;  %1122 = vmatmul.mubr.msk.bf16.vlgmr.msra.gmra.mrb[0].mxu1 %vm371_vm0, %v332_v14 }
  0x21   : > { %1125 = vmatprep.mubr.msk.bf16.mxu1 %vm371_vm0, %v333_v15  ;;  %p1278_p5 = pnand %p1277_p3, %p1271_p0 }
  0x27   : > { %1069 = vmatmul.mubr.msk.bf16.gmra.mrb[4].mxu0 %vm371_vm0, %v332_v14 }
  0x28   : > { %436 = vmatprep.mubr.bf16.mxu0 %v1348_v2  ;;  %1126 = vmatmul.mubr.msk.bf16.gmra.mrb[4].mxu1 %vm371_vm0, %v334_v18 }
  0x2f   : > { %1070 = vmatmul.mubr.msk.bf16.gmra.mrb[8].mxu0 %vm371_vm0, %v333_v15 }
  0x30   : > { %446 = vmatprep.mubr.bf16.mxu0 %v1348_v2 }
  0x37   : > { %1071 = vmatmul.mubr.msk.bf16.gmra.mrb[12].mxu0 %vm371_vm0, %v334_v18 }
  0xf2   : > { %v418_v25 = vpop.f32.mrb[0].mxu0 }
  0xf3   : > { %v420_v27 = vpop.f32.mrb[1].mxu0  ;;  %v419_v28 = vadd.f32 %v418_v25, %v344_v24  ;;  %v1123_v2 = vpop.f32.mrb[0].mxu1 }
  0xf4   : > { %v422_v29 = vpop.f32.mrb[2].mxu0  ;;  %v421_v31 = vadd.f32 %v420_v27, %v348_v26  ;;  %v1520_v4 = vadd.f32 %v1123_v2, %v1072_v3  ;;  %v598_v5 = vpop.f32.mrb[1].mxu1 }
  0xf5   : > { %v424_v30 = vpop.f32.mrb[3].mxu0  ;;  %457 = vxpose.xlu0.b32.start [1/8] (short) %v419_v28, 128  ;;  %v423_v33 = vadd.f32 %v422_v29, %v344_v24  ;;  %v599_v6 = vadd.f32 %v1072_v3, %v598_v5  ;;  %v1124_v9 = vpop.f32.mrb[2].mxu1 }
  0xf6   : > { %v425_v32 = vadd.f32 %v424_v30, %v348_v26  ;;  %v1522_v14 = vadd.f32 %v1124_v9, %v1072_v3  ;;  %v601_v15 = vpop.f32.mrb[3].mxu1 }
  0xf7   : > { %v602_v18 = vadd.f32 %v1072_v3, %v601_v15 }
  0xf8   : > { %v506_v34 = vpack.c.bf16 %v425_v32, %v421_v31  ;;  %v630_v19 = vpack.c.bf16 %v1522_v14, %v1520_v4 }
  0xf9   : > { %458 = vxpose.xlu0.b32.cont [2/8] (short) %v423_v33, 128  ;;  %v629_v20 = vpack.c.bf16 %v602_v18, %v599_v6 }
  0xfa   : > { %510 = vst.msk [vmem:[#allocation3] sm:$0xff] %vm371_vm0, %v506_v34  ;;  %v428_v35 = vpop.f32.mrb[4].mxu0 }
  0xfb   : > { %v429_v36 = vadd.f32 %v428_v35, %v344_v24  ;;  %v430_v37 = vpop.f32.mrb[5].mxu0  ;;  %1145 = vmatprep.mubr.bf16.mxu0 %v629_v20  ;;  %v1127_v21 = vpop.f32.mrb[4].mxu1 }
  0xfc   : > { %v432_v38 = vpop.f32.mrb[6].mxu0  ;;  %v431_v40 = vadd.f32 %v430_v37, %v348_v26  ;;  %v1526_v22 = vadd.f32 %v1127_v21, %v1072_v3  ;;  %v614_v23 = vpop.f32.mrb[5].mxu1 }
  0xfd   : > { %v434_v39 = vpop.f32.mrb[7].mxu0  ;;  %459 = vxpose.xlu0.b32.cont [3/8] (short) %v429_v36, 128  ;;  %v433_v42 = vadd.f32 %v432_v38, %v344_v24  ;;  %v1128_v25 = vpop.f32.mrb[6].mxu1 }
  0xfe   : > { %v435_v41 = vadd.f32 %v434_v39, %v348_v26  ;;  %v617_v27 = vpop.f32.mrb[7].mxu1 }
  0xff   : > { %v618_v28 = vadd.f32 %v1072_v3, %v617_v27 }
 0x100   : > { %v507_v43 = vpack.c.bf16 %v435_v41, %v431_v40 }
 0x101   : > { %460 = vxpose.xlu0.b32.cont [4/8] (short) %v433_v42, 128  ;;  %v807_v44 = vld [vmem:[#allocation3] sm:$0xff] }
 0x102   : > { %511 = vst.msk [vmem:[#allocation3 + $0x8] sm:$0xff] %vm371_vm0, %v507_v43  ;;  %v438_v45 = vpop.f32.mrb[8].mxu0  ;;  %1153 = vmatprep.subr.bf16.mxu1 %v807_v44 }
 0x103   : > { %v439_v46 = vadd.f32 %v438_v45, %v344_v24  ;;  %v440_v47 = vpop.f32.mrb[9].mxu0  ;;  %1154 = vmatpush3.bf16.msra.mxu1 %v807_v44 }
 0x104   : > { %v442_v48 = vpop.f32.mrb[10].mxu0  ;;  %v441_v50 = vadd.f32 %v440_v47, %v348_v26 }
 0x105   : > { %v444_v49 = vpop.f32.mrb[11].mxu0  ;;  %461 = vxpose.xlu0.b32.cont [5/8] (short) %v439_v46, 128  ;;  %v443_v52 = vadd.f32 %v442_v48, %v344_v24 }
 0x106   : > { %v445_v51 = vadd.f32 %v444_v49, %v348_v26 }
 0x108   : > { %v508_v53 = vpack.c.bf16 %v445_v51, %v441_v50 }
 0x109   : > { %462 = vxpose.xlu0.b32.cont [6/8] (short) %v443_v52, 128  ;;  %v808_v54 = vld [vmem:[#allocation3 + $0x8] sm:$0xff] }
 0x10a   : > { %512 = vst.msk [vmem:[#allocation3 + $0x10] sm:$0xff] %vm371_vm0, %v508_v53  ;;  %v448_v55 = vpop.f32.mrb[12].mxu0  ;;  %1155 = vmatprep.subr.bf16.mxu1 %v808_v54 }
 0x10b   : > { %v449_v56 = vadd.f32 %v448_v55, %v344_v24  ;;  %v450_v57 = vpop.f32.mrb[13].mxu0  ;;  %1156 = vmatpush3.bf16.msra.mxu1 %v808_v54 }
 0x10c   : > { %v452_v58 = vpop.f32.mrb[14].mxu0  ;;  %v451_v60 = vadd.f32 %v450_v57, %v348_v26 }
 0x10d   : > { %v454_v59 = vpop.f32.mrb[15].mxu0  ;;  %463 = vxpose.xlu0.b32.cont [7/8] (short) %v449_v56, 128  ;;  %v453_v62 = vadd.f32 %v452_v58, %v344_v24  ;;  %v1528_v24 = vadd.f32 %v1072_v3, %v614_v23 }
 0x10e   : > { %v455_v61 = vadd.f32 %v454_v59, %v348_v26  ;;  %v1530_v26 = vadd.f32 %v1128_v25, %v1072_v3 }
 0x10f   : > { %v631_v30 = vpack.c.bf16 %v618_v28, %v1528_v24 }
 0x110   : > { %v509_v63 = vpack.c.bf16 %v455_v61, %v451_v60  ;;  %v632_v29 = vpack.c.bf16 %v1530_v26, %v1526_v22 }
 0x111   : > { %464 = vxpose.xlu0.b32.end [8/8] (short) %v453_v62, 128  ;;  %v809_v0 = vld [vmem:[#allocation3 + $0x10] sm:$0xff] }
 0x112   : > { %513 = vst.msk [vmem:[#allocation3 + $0x18] sm:$0xff] %vm371_vm0, %v509_v63  ;;  %1157 = vmatprep.subr.bf16.mxu1 %v809_v0 }
 0x113   : > { %1158 = vmatpush3.bf16.msra.mxu1 %v809_v0 }
 0x119   : > { %v810_v1 = vld [vmem:[#allocation3 + $0x18] sm:$0xff] }
 0x11a   : > { %1159 = vmatprep.subr.bf16.mxu1 %v810_v1 }
 0x11b   : > { %1160 = vmatpush3.bf16.msra.mxu1 %v810_v1 }
 0x175   : > { %v473_v31 = vpop.trf.xlu0 }
 0x179   : > { %v474_v32 = vpop.trf.xlu0 }
 0x17a   : > { %v489_v33 = vpack.c.bf16 %v474_v32, %v473_v31 }
 0x17c   : > { %498 = vst.msk [vmem:[#allocation2] sm:$0xff] %vm497_vm1, %v489_v33 }
 0x17d   : > { %v475_v34 = vpop.trf.xlu0 }
 0x181   : > { %v476_v35 = vpop.trf.xlu0 }
 0x182   : > { %v490_v36 = vpack.c.bf16 %v476_v35, %v475_v34 }
 0x183   : > { %v633_v37 = vld [vmem:[#allocation2] sm:$0xff] }
 0x184   : > { %499 = vst.msk [vmem:[#allocation2 + $0x8] sm:$0xff] %vm497_vm1, %v490_v36  ;;  %1129 = vmatprep.subr.bf16.mxu0 %v633_v37 }
 0x185   : > { %1130 = vmatpush3.bf16.msra.mxu0 %v633_v37  ;;  %v477_v38 = vpop.trf.xlu0 }
 0x189   : > { %v478_v39 = vpop.trf.xlu0 }
 0x18a   : > { %v491_v40 = vpack.c.bf16 %v478_v39, %v477_v38 }
 0x18b   : > { %v634_v41 = vld [vmem:[#allocation2 + $0x8] sm:$0xff] }
 0x18c   : > { %500 = vst.msk [vmem:[#allocation2 + $0x10] sm:$0xff] %vm497_vm1, %v491_v40  ;;  %1131 = vmatprep.subr.bf16.mxu0 %v634_v41 }
 0x18d   : > { %1132 = vmatpush3.bf16.msra.mxu0 %v634_v41  ;;  %v479_v42 = vpop.trf.xlu0 }
 0x191   : > { %v480_v43 = vpop.trf.xlu0 }
 0x192   : > { %v492_v44 = vpack.c.bf16 %v480_v43, %v479_v42 }
 0x193   : > { %v635_v45 = vld [vmem:[#allocation2 + $0x10] sm:$0xff] }
 0x194   : > { %501 = vst.msk [vmem:[#allocation2 + $0x18] sm:$0xff] %vm497_vm1, %v492_v44  ;;  %1133 = vmatprep.subr.bf16.mxu0 %v635_v45 }
 0x195   : > { %1134 = vmatpush3.bf16.msra.mxu0 %v635_v45  ;;  %v481_v46 = vpop.trf.xlu0 }
 0x199   : > { %v482_v47 = vpop.trf.xlu0 }
 0x19a   : > { %v493_v48 = vpack.c.bf16 %v482_v47, %v481_v46 }
 0x19b   : > { %v636_v49 = vld [vmem:[#allocation2 + $0x18] sm:$0xff] }
 0x19c   : > { %502 = vst.msk [vmem:[#allocation2 + $0x20] sm:$0xff] %vm497_vm1, %v493_v48  ;;  %1135 = vmatprep.subr.bf16.mxu0 %v636_v49 }
 0x19d   : > { %1136 = vmatpush3.bf16.msra.mxu0 %v636_v49  ;;  %v483_v50 = vpop.trf.xlu0 }
 0x1a1   : > { %v484_v51 = vpop.trf.xlu0 }
 0x1a2   : > { %v494_v52 = vpack.c.bf16 %v484_v51, %v483_v50 }
 0x1a3   : > { %v637_v53 = vld [vmem:[#allocation2 + $0x20] sm:$0xff] }
 0x1a4   : > { %503 = vst.msk [vmem:[#allocation2 + $0x28] sm:$0xff] %vm497_vm1, %v494_v52  ;;  %1137 = vmatprep.subr.bf16.mxu0 %v637_v53 }
 0x1a5   : > { %1138 = vmatpush3.bf16.msra.mxu0 %v637_v53  ;;  %v485_v54 = vpop.trf.xlu0 }
 0x1a9   : > { %v486_v55 = vpop.trf.xlu0 }
 0x1aa   : > { %v495_v56 = vpack.c.bf16 %v486_v55, %v485_v54 }
 0x1ab   : > { %v638_v57 = vld [vmem:[#allocation2 + $0x28] sm:$0xff] }
 0x1ac   : > { %504 = vst.msk [vmem:[#allocation2 + $0x30] sm:$0xff] %vm497_vm1, %v495_v56  ;;  %1139 = vmatprep.subr.bf16.mxu0 %v638_v57 }
 0x1ad   : > { %1140 = vmatpush3.bf16.msra.mxu0 %v638_v57  ;;  %v487_v58 = vpop.trf.xlu0 }
 0x1b1   : > { %v488_v59 = vpop.trf.xlu0 }
 0x1b2   : > { %v496_v60 = vpack.c.bf16 %v488_v59, %v487_v58 }
 0x1b3   : > { %v639_v61 = vld [vmem:[#allocation2 + $0x30] sm:$0xff] }
 0x1b4   : > { %505 = vst.msk [vmem:[#allocation2 + $0x38] sm:$0xff] %vm497_vm1, %v496_v60  ;;  %1141 = vmatprep.subr.bf16.mxu0 %v639_v61 }
 0x1b5   : > { %1142 = vmatpush3.bf16.msra.mxu0 %v639_v61 }
 0x1bb   : > { %v640_v62 = vld [vmem:[#allocation2 + $0x38] sm:$0xff] }
 0x1bc   : > { %1143 = vmatprep.subr.bf16.mxu0 %v640_v62 }
 0x1bd   : > { %1144 = vmatpush3.bf16.msra.mxu0 %v640_v62 }
 0x1c0   : > { %1146 = vmatmul.mubr.bf16.vlgmr.msra.gmra.mrb[16].mxu0 %v630_v19 }
 0x1c1   : > { %1149 = vmatprep.mubr.bf16.mxu0 %v631_v30 }
 0x1c8   : > { %1150 = vmatmul.mubr.bf16.gmra.mrb[20].mxu0 %v632_v29 }
 0x293   : > { %v1147_v63 = vpop.f32.mrb[16].mxu0 }
 0x294   : > { %v675_v0 = vpop.f32.mrb[17].mxu0  ;;  %v713_v1 = vsel %vm497_vm1, %v1147_v63, -inf }
 0x295   : > { %714 = vmax.xlane.f32.xlu1 %v713_v1  ;;  %v1148_v2 = vpop.f32.mrb[18].mxu0  ;;  %v707_v5 = vsel %vm497_vm1, %v675_v0, -inf }
 0x296   : > { %v678_v3 = vpop.f32.mrb[19].mxu0  ;;  %v716_v9 = vsel %vm497_vm1, %v1148_v2, -inf }
 0x297   : > { %v710_v14 = vsel %vm497_vm1, %v678_v3, -inf }
 0x299   : > { %708 = vmax.xlane.f32.xlu1 %v707_v5 }
 0x29b   : > { %v1151_v6 = vpop.f32.mrb[20].mxu0 }
 0x29c   : > { %v691_v15 = vpop.f32.mrb[21].mxu0  ;;  %v725_v19 = vsel %vm497_vm1, %v1151_v6, -inf }
 0x29d   : > { %717 = vmax.xlane.f32.xlu1 %v716_v9  ;;  %v1152_v18 = vpop.f32.mrb[22].mxu0  ;;  %v719_v20 = vsel %vm497_vm1, %v691_v15, -inf }
 0x29e   : > { %v694_v4 = vpop.f32.mrb[23].mxu0  ;;  %v728_v22 = vsel %vm497_vm1, %v1152_v18, -inf }
 0x29f   : > { %v722_v21 = vsel %vm497_vm1, %v694_v4, -inf }
 0x2a1   : > { %711 = vmax.xlane.f32.xlu1 %v710_v14 }
 0x2a5   : > { %726 = vmax.xlane.f32.xlu1 %v725_v19 }
 0x2a9   : > { %720 = vmax.xlane.f32.xlu1 %v719_v20 }
 0x2ad   : > { %723 = vmax.xlane.f32.xlu1 %v722_v21 }
 0x2b1   : > { %729 = vmax.xlane.f32.xlu1 %v728_v22 }
 0x322   : > { %v715_v23 = vpop.xlane.xlu1 %714 }
 0x323   : > { %v733_v24 = vsub.f32 %v1147_v63, %v715_v23 }
 0x325   : > { %v743_v25 = vmul.f32 1.442695, %v733_v24 }
 0x326   : > { %v709_v26 = vpop.xlane.xlu1 %708 }
 0x327   : > { %1236 = vpow2.f32 %v743_v25  ;;  %v731_v27 = vsub.f32 %v675_v0, %v709_v26 }
 0x329   : > { %v739_v28 = vmul.f32 1.442695, %v731_v27 }
 0x32a   : > { %v718_v29 = vpop.xlane.xlu1 %717 }
 0x32b   : > { %1238 = vpow2.f32 %v739_v28  ;;  %v734_v30 = vsub.f32 %v1148_v2, %v718_v29 }
 0x32d   : > { %v745_v31 = vmul.f32 1.442695, %v734_v30 }
 0x32e   : > { %v712_v32 = vpop.xlane.xlu1 %711 }
 0x32f   : > { %1240 = vpow2.f32 %v745_v31  ;;  %v732_v33 = vsub.f32 %v678_v3, %v712_v32 }
 0x331   : > { %v1237_v34 = vpop.eup %1236  ;;  %v741_v35 = vmul.f32 1.442695, %v732_v33 }
 0x332   : > { %v727_v36 = vpop.xlane.xlu1 %726  ;;  %v761_v37 = vsel %vm497_vm1, %v1237_v34, 0.0 }
 0x333   : > { %1242 = vpow2.f32 %v741_v35  ;;  %v737_v38 = vsub.f32 %v1151_v6, %v727_v36  ;;  %762 = vadd.xlane.f32.xlu1 %v761_v37 }
 0x335   : > { %v1239_v39 = vpop.eup %1238  ;;  %v751_v40 = vmul.f32 1.442695, %v737_v38 }
 0x336   : > { %v721_v41 = vpop.xlane.xlu1 %720  ;;  %v755_v42 = vsel %vm497_vm1, %v1239_v39, 0.0 }
 0x337   : > { %1244 = vpow2.f32 %v751_v40  ;;  %v735_v43 = vsub.f32 %v691_v15, %v721_v41  ;;  %756 = vadd.xlane.f32.xlu0 %v755_v42 }
 0x339   : > { %v1241_v44 = vpop.eup %1240  ;;  %v747_v45 = vmul.f32 1.442695, %v735_v43 }
 0x33a   : > { %v724_v46 = vpop.xlane.xlu1 %723  ;;  %v764_v47 = vsel %vm497_vm1, %v1241_v44, 0.0 }
 0x33b   : > { %1246 = vpow2.f32 %v747_v45  ;;  %v736_v48 = vsub.f32 %v694_v4, %v724_v46  ;;  %765 = vadd.xlane.f32.xlu1 %v764_v47 }
 0x33d   : > { %v1243_v49 = vpop.eup %1242  ;;  %v749_v50 = vmul.f32 1.442695, %v736_v48 }
 0x33e   : > { %v730_v51 = vpop.xlane.xlu1 %729  ;;  %v758_v52 = vsel %vm497_vm1, %v1243_v49, 0.0 }
 0x33f   : > { %1248 = vpow2.f32 %v749_v50  ;;  %v738_v53 = vsub.f32 %v1152_v18, %v730_v51  ;;  %759 = vadd.xlane.f32.xlu1 %v758_v52 }
 0x341   : > { %v1245_v54 = vpop.eup %1244  ;;  %v753_v55 = vmul.f32 1.442695, %v738_v53 }
 0x342   : > { %v773_v56 = vsel %vm497_vm1, %v1245_v54, 0.0 }
 0x343   : > { %1250 = vpow2.f32 %v753_v55  ;;  %774 = vadd.xlane.f32.xlu1 %v773_v56 }
 0x345   : > { %v1247_v57 = vpop.eup %1246 }
 0x346   : > { %v767_v58 = vsel %vm497_vm1, %v1247_v57, 0.0 }
 0x347   : > { %768 = vadd.xlane.f32.xlu1 %v767_v58 }
 0x349   : > { %v1249_v59 = vpop.eup %1248 }
 0x34a   : > { %v770_v60 = vsel %vm497_vm1, %v1249_v59, 0.0 }
 0x34b   : > { %771 = vadd.xlane.f32.xlu1 %v770_v60 }
 0x34d   : > { %v1251_v61 = vpop.eup %1250 }
 0x34e   : > { %v776_v62 = vsel %vm497_vm1, %v1251_v61, 0.0 }
 0x34f   : > { %777 = vadd.xlane.f32.xlu1 %v776_v62 }
 0x3c0   : > { %v763_v63 = vpop.xlane.xlu1 %762 }
 0x3c1   : > { %1252 = vrcp.f32 %v763_v63 }
 0x3c4   : > { %v757_v0 = vpop.xlane.xlu0 %756 }
 0x3c5   : > { %1254 = vrcp.f32 %v757_v0 }
 0x3c8   : > { %v766_v1 = vpop.xlane.xlu1 %765 }
 0x3c9   : > { %1256 = vrcp.f32 %v766_v1 }
 0x3cb   : > { %v1253_v2 = vpop.eup %1252 }
 0x3cc   : > { %v789_v3 = vmul.f32 %v1253_v2, %v1237_v34  ;;  %v760_v5 = vpop.xlane.xlu1 %759 }
 0x3cd   : > { %1258 = vrcp.f32 %v760_v5 }
 0x3ce   : > { %797 = vst.msk [vmem:[%s1565_s5 + $0x10] sm:$0xff] %vm497_vm1, %v789_v3 }
 0x3cf   : > { %v1255_v6 = vpop.eup %1254 }
 0x3d0   : > { %v775_v9 = vpop.xlane.xlu1 %774  ;;  %v787_v15 = vmul.f32 %v1255_v6, %v1239_v39 }
 0x3d1   : > { %1260 = vrcp.f32 %v775_v9 }
 0x3d2   : > { %795 = vst.msk [vmem:[%s1565_s5] sm:$0xff] %vm497_vm1, %v787_v15 }
 0x3d3   : > { %v1257_v18 = vpop.eup %1256 }
 0x3d4   : > { %v790_v4 = vmul.f32 %v1257_v18, %v1241_v44  ;;  %v769_v14 = vpop.xlane.xlu1 %768 }
 0x3d5   : > { %1262 = vrcp.f32 %v769_v14 }
 0x3d6   : > { %798 = vst.msk [vmem:[%s1565_s5 + $0x18] sm:$0xff] %vm497_vm1, %v790_v4  ;;  %v804_v24 = vpack.c.bf16 %v790_v4, %v789_v3 }
 0x3d7   : > { %v1259_v19 = vpop.eup %1258 }
 0x3d8   : > { %v772_v20 = vpop.xlane.xlu1 %771  ;;  %v788_v21 = vmul.f32 %v1259_v19, %v1243_v49 }
 0x3d9   : > { %1264 = vrcp.f32 %v772_v20 }
 0x3da   : > { %796 = vst.msk [vmem:[%s1565_s5 + $0x8] sm:$0xff] %vm497_vm1, %v788_v21  ;;  %v803_v22 = vpack.c.bf16 %v788_v21, %v787_v15 }
 0x3db   : > { %v1261_v23 = vpop.eup %1260 }
 0x3dc   : > { %1161 = vmatprep.mubr.msk.bf16.mxu1 %vm497_vm1, %v803_v22  ;;  %v778_v25 = vpop.xlane.xlu1 %777  ;;  %v793_v26 = vmul.f32 %v1261_v23, %v1245_v54 }
 0x3dd   : > { %1266 = vrcp.f32 %v778_v25  ;;  %1162 = vmatmul.mubr.msk.bf16.vlgmr.msra.gmra.mrb[8].mxu1 %vm497_vm1, %v804_v24 }
 0x3de   : > { %801 = vst.msk [vmem:[%s1565_s5 + $0x30] sm:$0xff] %vm497_vm1, %v793_v26 }
 0x3df   : > { %v1263_v27 = vpop.eup %1262 }
 0x3e0   : > { %v791_v28 = vmul.f32 %v1263_v27, %v1247_v57 }
 0x3e2   : > { %799 = vst.msk [vmem:[%s1565_s5 + $0x20] sm:$0xff] %vm497_vm1, %v791_v28 }
 0x3e3   : > { %v1265_v29 = vpop.eup %1264 }
 0x3e4   : > { %v792_v30 = vmul.f32 %v1265_v29, %v1249_v59 }
 0x3e6   : > { %800 = vst.msk [vmem:[%s1565_s5 + $0x28] sm:$0xff] %vm497_vm1, %v792_v30  ;;  %v805_v31 = vpack.c.bf16 %v792_v30, %v791_v28 }
 0x3e7   : > { %v1267_v32 = vpop.eup %1266 }
 0x3e8   : > { %1165 = vmatprep.mubr.msk.bf16.mxu1 %vm497_vm1, %v805_v31  ;;  %v794_v33 = vmul.f32 %v1267_v32, %v1251_v61 }
 0x3ea   : > { %802 = vst.msk [vmem:[%s1565_s5 + $0x38] sm:$0xff] %vm497_vm1, %v794_v33  ;;  %v806_v34 = vpack.c.bf16 %v794_v33, %v793_v26 }
 0x3ec   : > { %1166 = vmatmul.mubr.msk.bf16.gmra.mrb[12].mxu1 %vm497_vm1, %v806_v34 }
 0x3ed   : > { %1281 = shalt.err (!%p1278_p5)
}
 0x3ee   : > { %s1282_s23 = scalar_lea.hbm %s1592_s18, 1024  ;;  %s1286_s11 = scalar_lea.hbm %s1672_s7, 2048 }
 0x3ef   : > { %p1283_p6 = scmp.ne.s32.totalorder %s1592_s18, %s1282_s23  ;;  %p1287_p10 = scmp.lt.u32.totalorder %s1592_s18, %s1672_s7 }
 0x3f0   : > { %p1288_p11 = scmp.lt.u32.totalorder %s1286_s11, %s1282_s23  ;;  %p1290_p13 = scmp.lt.u32.totalorder %s1282_s23, %s1592_s18 }
 0x3f1   : > { %p1284_p7 = pnand %p1283_p6, %p1435_p4 }
 0x3f2   : > { %p1289_p12 = por %p1288_p11, %p1287_p10 }
 0x3f3   : > { %p1285_p9 = pneg %p1284_p7 }
 0x3f4   : > { %p1291_p0 = por %p1290_p13, %p1289_p12 }
 0x3f6   : > { %p1292_p1 = pnand %p1291_p0, %p1285_p9 }
 0x3f8   : > { %1295 = shalt.err (!%p1292_p1)
}
 0x3f9   : > { %s1350_s20 = smov 128   ;;  %s1351_s29 = smov 8  }
 0x3fa   : > { %1169 = dma.vmem_to_hbm [thread:$0]  (%p1435_p4), %s1594_s13, 1024, %s1592_s18, %s1598_s19, %s1350_s20, %s1350_s20, %s1351_s29  }
 0x3fb   : > { %s318_s21 = sld [smem:[#allocation4]]  ;;  %s314_s25 = scalar_lea.vmem %s1671_s6, %s1088_s9 }
 0x401   : > { %v888_v35 = vstv %s318_s21 }
 0x4b0   : > { %v1163_v36 = vpop.f32.mrb[8].mxu1 }
 0x4b1   : > { %v891_v37 = vmul.f32 %v1163_v36, %v888_v35  ;;  %v857_v38 = vpop.f32.mrb[9].mxu1 }
 0x4b2   : > { %v889_v39 = vmul.f32 %v888_v35, %v857_v38  ;;  %v1164_v40 = vpop.f32.mrb[10].mxu1 }
 0x4b3   : > { %v899_v41 = vadd.f32 %v891_v37, %v1484_v10  ;;  %v892_v42 = vmul.f32 %v1164_v40, %v888_v35  ;;  %v860_v43 = vpop.f32.mrb[11].mxu1 }
 0x4b4   : > { %v897_v44 = vadd.f32 %v889_v39, %v1478_v7  ;;  %v890_v45 = vmul.f32 %v888_v35, %v860_v43 }
 0x4b5   : > { %907 = vst.msk [vmem:[%s314_s25 + $0x10] sm:$0xff] %vm371_vm0, %v899_v41  ;;  %v900_v46 = vadd.f32 %v892_v42, %v1486_v11 }
 0x4b6   : > { %905 = vst.msk [vmem:[%s314_s25] sm:$0xff] %vm371_vm0, %v897_v44  ;;  %v898_v47 = vadd.f32 %v890_v45, %v1480_v8 }
 0x4b7   : > { %908 = vst.msk [vmem:[%s314_s25 + $0x18] sm:$0xff] %vm371_vm0, %v900_v46 }
 0x4b8   : > { %906 = vst.msk [vmem:[%s314_s25 + $0x8] sm:$0xff] %vm371_vm0, %v898_v47 }
 0x4bf   : > { %v1167_v48 = vpop.f32.mrb[12].mxu1 }
 0x4c0   : > { %v895_v49 = vmul.f32 %v1167_v48, %v888_v35  ;;  %v873_v10 = vpop.f32.mrb[13].mxu1 }
 0x4c1   : > { %v893_v50 = vmul.f32 %v888_v35, %v873_v10  ;;  %v1168_v51 = vpop.f32.mrb[14].mxu1 }
 0x4c2   : > { %v903_v7 = vadd.f32 %v895_v49, %v1500_v16  ;;  %v896_v52 = vmul.f32 %v1168_v51, %v888_v35  ;;  %v876_v53 = vpop.f32.mrb[15].mxu1 }
 0x4c3   : > { %v901_v54 = vadd.f32 %v893_v50, %v1488_v12  ;;  %v894_v11 = vmul.f32 %v888_v35, %v876_v53 }
 0x4c4   : > { %911 = vst.msk [vmem:[%s314_s25 + $0x30] sm:$0xff] %vm371_vm0, %v903_v7  ;;  %v904_v8 = vadd.f32 %v896_v52, %v1502_v17 }
 0x4c5   : > { %909 = vst.msk [vmem:[%s314_s25 + $0x20] sm:$0xff] %vm371_vm0, %v901_v54  ;;  %v902_v55 = vadd.f32 %v894_v11, %v1490_v13 }
 0x4c6   : > { %912 = vst.msk [vmem:[%s314_s25 + $0x38] sm:$0xff] %vm371_vm0, %v904_v8 }
 0x4c7   : > { %910 = vst.msk [vmem:[%s314_s25 + $0x28] sm:$0xff] %vm371_vm0, %v902_v55 }
 0x4c8 PF: > { %p1175_p4 = scmp.ge.s32.totalorder %s1346_s8, 2  ;;  %s969_s12 = sand.u32 1, %s1326_s26  }
 0x4c9   : > { %s970_s24 = scalar_lea.sflag [#allocation6], %s969_s12 }
 0x4ca   : > { %p1172_p2 = pnand %p1175_p4, %p1442_p8 }
 0x4cc   : > { %1321 = dma.done.wait (!%p1172_p2), %s970_s24, 1024  }
 0x4cd   : > { %1323 = vsyncadd (!%p1172_p2), %s970_s24, 4294966272  ;;  %s22_s8 = sadd.s32 1, %s1346_s8   ;;  %s1675_s26 = smov %s1330_s27 }
 0x4ce   : > { %p19_p3 = scmp.ge.s32.totalorder %s22_s8, 4   ;;  %s1676_s27 = smov %s1334_s28 }
 0x4cf   : > { %s1677_s28 = smov %s1448_s15  ;;  %s1678_s29 = smov %s1342_s30 }
 0x4d0   : > { %s1679_s30 = smov %s1681_s10  ;;  %21 = sbr.rel (!%p19_p3) target bundleno = 6 (0x6), region = 96 }
 0x4d7   :  { %975 = vsyncpa [#allocation6], 1 }
 0x4d8   :  { %977 = vsyncpa [#allocation6 + $0x1], 1 }

</bundles_post_ra>
